<compile_context>
chip_gen: v7x
topology: tpu7x:2x2x1
jax: 0.10.0
libtpu: 0.0.40
codegen_flags: <defaults>
</compile_context>

<pallas_src>
import functools

import jax
import jax.numpy as jnp
from jax.experimental import pallas as pl
from jax.experimental.pallas import tpu as pltpu

IN_F, H1, H2, OUT_F = 50, 128, 64, 2
DROPOUT_RATE = 0.3

# --- Plain-Python constants only (NOT jnp arrays), so the kernel never captures
# --- device constants.
# uint32 path (in-kernel PRNG): drop iff bits < thresh;  P(drop) ~= 0.3 + 2e-10.
_THRESH_U32 = int(DROPOUT_RATE * (1 << 32))                       # 1288490188
_SCALE_U32 = float((1 << 32) / ((1 << 32) - _THRESH_U32))         # ~1/0.7 (unbiased)
# uint8 path (host-generated packed masks): drop iff byte < 77; P(drop) = 77/256.
_THRESH_U8 = int(round(DROPOUT_RATE * 256))                       # 77
_SCALE_U8 = float(256.0 / (256 - _THRESH_U8))                     # unbiased inverse keep-prob


def _dropout_masks(rng, n_rows):
    """One packed uint8 mask array (n_rows, H1+H2): cols [0,H1) for layer-1, rest layer-2."""
    return jax.random.bits(rng, (n_rows, H1 + H2), jnp.uint8)


def mlp_kernel(x_ref, w1_ref, b1_ref, w2_ref, b2_ref, w3_ref, b3_ref, *rest, mode):
    """mode in {'eval', 'host_mask', 'hw_prng'}."""
    o_ref = rest[-1]

    # fc1 + relu (K=50, N=128 -> single MXU pass; bf16 operands, f32 accumulate)
    h = jnp.dot(x_ref[...].astype(jnp.bfloat16), w1_ref[...],
                preferred_element_type=jnp.float32)
    h = jnp.maximum(h + b1_ref[...], 0.0)

    if mode == "host_mask":
        m_ref = rest[0]                                   # (tb, H1+H2) uint8, one DMA/step
        keep1 = m_ref[:, :H1].astype(jnp.int32) >= _THRESH_U8
        keep2 = m_ref[:, H1:].astype(jnp.int32) >= _THRESH_U8
        h = jnp.where(keep1, h * _SCALE_U8, 0.0)
    elif mode == "hw_prng":
        seed_ref = rest[0]                                # (1,) int32 in SMEM
        pltpu.prng_seed(seed_ref[0] + pl.program_id(0))   # per-tile independent stream
        bits1 = pltpu.bitcast(pltpu.prng_random_bits(h.shape), jnp.uint32)
        h = jnp.where(bits1 >= _THRESH_U32, h * _SCALE_U32, 0.0)

    # fc2 + relu
    h = jnp.dot(h.astype(jnp.bfloat16), w2_ref[...], preferred_element_type=jnp.float32)
    h = jnp.maximum(h + b2_ref[...], 0.0)
    if mode == "host_mask":
        h = jnp.where(keep2, h * _SCALE_U8, 0.0)
    elif mode == "hw_prng":
        bits2 = pltpu.bitcast(pltpu.prng_random_bits(h.shape), jnp.uint32)
        h = jnp.where(bits2 >= _THRESH_U32, h * _SCALE_U32, 0.0)

    # fc3 (no activation)
    out = jnp.dot(h.astype(jnp.bfloat16), w3_ref[...], preferred_element_type=jnp.float32)
    o_ref[...] = (out + b3_ref[...]).astype(o_ref.dtype)


def _vmem_limit_bytes(tb, mode):
    """Lane-padded VMEM budget for the streamed buffers (double-buffered) + intermediates."""
    lane = lambda n: ((n + 127) // 128) * 128
    est = 2 * tb * lane(IN_F) * 4 + 2 * tb * lane(OUT_F) * 4          # x / out buffers
    if mode == "host_mask":
        est += 2 * tb * lane(H1 + H2)                                  # uint8 mask buffers
    est += tb * (lane(H1) + lane(H2)) * 6                              # f32 + bf16 activations
    est += 256 * 1024                                                  # weights/biases + slack
    # Keep the request within every generation's scoped ceiling (v7x: 64 MiB physical).
    return int(min(max(32 << 20, 2 * est), 56 << 20))


def dropout_net(x, params, *, train, rng=None, seed=0, use_hw_prng=False,
                block_b=2048, core_parallel=False):
    """x: (B, 50) f32 -> (B, 2) f32, matching PyTorch dropoutNet.forward.

    train=False            : dropout disabled (eval mode).
    train=True, use_hw_prng=False : host-generated packed uint8 masks (deterministic,
                                    interpret-safe; pass `rng`).
    train=True, use_hw_prng=True  : in-kernel hardware PRNG (zero mask HBM traffic;
                                    preferred on real TPU hardware; pass `seed`).
    core_parallel=True     : shard the batch grid across TensorCores (v7x).
    block_b                : batch rows per grid step (multiple of 8).  2048 is safe on
                             v5e/v7x; push to 4096-8192 on v6e.
    """
    w1, b1, w2, b2, w3, b3 = params
    B, F = x.shape
    assert F == IN_F, f"expected {IN_F} input features, got {F}"
    assert block_b % 8 == 0

    # Batch tile: full batch if it fits one block, else block_b (ragged tail is
    # masked by Pallas -- no wrapper-side jnp.pad / extra HBM pass over x).
    tb = B if B <= block_b else block_b
    grid = (pl.cdiv(B, tb),)

    row = lambda i: (i, 0)     # streamed with the batch tile
    const = lambda i: (0, 0)   # weights/biases: same block every step -> VMEM resident
    # TODO(synk): once supported everywhere, mark weight/bias specs pipeline_mode=pl.Buffered(1)
    # to drop their duplicated double-buffers (~60 KB of VMEM).
    in_specs = [
        pl.BlockSpec((tb, IN_F), row),
        pl.BlockSpec(w1.shape, const), pl.BlockSpec(b1.shape, const),
        pl.BlockSpec(w2.shape, const), pl.BlockSpec(b2.shape, const),
        pl.BlockSpec(w3.shape, const), pl.BlockSpec(b3.shape, const),
    ]
    args = [x, w1, b1, w2, b2, w3, b3]

    param_bytes = sum(int(p.size) * p.dtype.itemsize for p in params)
    bytes_accessed = B * IN_F * 4 + B * OUT_F * 4 + param_bytes

    mode = "eval"
    if train:
        if use_hw_prng:
            mode = "hw_prng"
            args.append(jnp.asarray([seed], dtype=jnp.int32))
            in_specs.append(pl.BlockSpec(memory_space=pltpu.MemorySpace.SMEM))
        else:
            if rng is None:
                raise ValueError("train=True with use_hw_prng=False requires an rng key")
            mode = "host_mask"
            masks = _dropout_masks(rng, B)          # exactly B rows -> matches reference
            args.append(masks)
            in_specs.append(pl.BlockSpec((tb, H1 + H2), row))
            bytes_accessed += B * (H1 + H2)

    out_spec = pl.BlockSpec((tb, OUT_F), row)       # last dim == full array dim
    sem = (pltpu.CORE_PARALLEL if core_parallel else "parallel",)

    kernel = functools.partial(mlp_kernel, mode=mode)
    return pl.pallas_call(
        kernel,
        out_shape=jax.ShapeDtypeStruct((B, OUT_F), jnp.float32),
        grid=grid,
        in_specs=in_specs,
        out_specs=out_spec,
        compiler_params=pltpu.CompilerParams(
            dimension_semantics=sem,
            vmem_limit_bytes=_vmem_limit_bytes(tb, mode)),
        cost_estimate=pl.CostEstimate(
            flops=2 * B * (IN_F * H1 + H1 * H2 + H2 * OUT_F),
            transcendentals=0,
            bytes_accessed=bytes_accessed),
    )(*args)


def init_params(key):
    """nn.Linear-style init; weights stored (in, out) in bf16, biases (1, out) in f32."""
    sizes = [(IN_F, H1), (H1, H2), (H2, OUT_F)]
    params = []
    for i, (fin, fout) in enumerate(sizes):
        kw, kb = jax.random.split(jax.random.fold_in(key, i))
        bound = 1.0 / (fin ** 0.5)
        w = jax.random.uniform(kw, (fin, fout), jnp.float32, -bound, bound)
        b = jax.random.uniform(kb, (1, fout), jnp.float32, -bound, bound)
        params += [w.astype(jnp.bfloat16), b]
    return tuple(params)


def reference(x, params, masks=None):
    """Pure-JAX reference mirroring the kernel numerics (bf16 dot operands, f32 accum).
    masks=None -> eval mode; masks=(B, H1+H2) uint8 -> train mode."""
    w1, b1, w2, b2, w3, b3 = params
    h = jnp.dot(x.astype(jnp.bfloat16), w1, preferred_element_type=jnp.float32) + b1
    h = jnp.maximum(h, 0.0)
    if masks is not None:
        h = jnp.where(masks[:, :H1].astype(jnp.int32) >= _THRESH_U8, h * _SCALE_U8, 0.0)
    h = jnp.dot(h.astype(jnp.bfloat16), w2, preferred_element_type=jnp.float32) + b2
    h = jnp.maximum(h, 0.0)
    if masks is not None:
        h = jnp.where(masks[:, H1:].astype(jnp.int32) >= _THRESH_U8, h * _SCALE_U8, 0.0)
    return jnp.dot(h.astype(jnp.bfloat16), w3, preferred_element_type=jnp.float32) + b3


if __name__ == "__main__":
    key = jax.random.PRNGKey(0)
    params = init_params(key)

    # --- Small single-tile check -------------------------------------------
    x = jax.random.normal(jax.random.fold_in(key, 100), (16, IN_F), jnp.float32)

    y_eval = jax.block_until_ready(dropout_net(x, params, train=False))
    assert y_eval.shape == (16, OUT_F)
    assert jnp.allclose(y_eval, reference(x, params), rtol=1e-2, atol=1e-2)

    rng = jax.random.fold_in(key, 7)
    y_train = jax.block_until_ready(dropout_net(x, params, train=True, rng=rng))
    assert y_train.shape == (16, OUT_F)
    assert jnp.allclose(y_train, reference(x, params, _dropout_masks(rng, 16)),
                        rtol=1e-2, atol=1e-2)

    # --- Multi-step grid with a ragged trailing batch tile (no jnp.pad) -----
    xb = jax.random.normal(jax.random.fold_in(key, 200), (1000, IN_F), jnp.float32)

    yb = jax.block_until_ready(dropout_net(xb, params, train=False, block_b=256))
    assert yb.shape == (1000, OUT_F)
    assert jnp.allclose(yb, reference(xb, params), rtol=1e-2, atol=1e-2)

    rngb = jax.random.fold_in(key, 8)
    ybt = jax.block_until_ready(dropout_net(xb, params, train=True, rng=rngb, block_b=256))
    assert jnp.allclose(ybt, reference(xb, params, _dropout_masks(rngb, 1000)),
                        rtol=1e-2, atol=1e-2)

    # TODO(synk): on real TPU hardware, benchmark train mode with use_hw_prng=True
    # (zero mask HBM traffic) and core_parallel=True on v7x; not exercised here
    # because the interpret/debug harness may not lower pltpu.prng_random_bits.

    print("KERNEL_OK")
</pallas_src>

<mosaic_0001>
module attributes {stable_mosaic.version = 11 : i64} {
  func.func @mlp_kernel(%arg0: i32, %arg1: memref<16x50xf32, #tpu.memory_space<vmem>>, %arg2: memref<50x128xbf16, #tpu.memory_space<vmem>>, %arg3: memref<1x128xf32, #tpu.memory_space<vmem>>, %arg4: memref<128x64xbf16, #tpu.memory_space<vmem>>, %arg5: memref<1x64xf32, #tpu.memory_space<vmem>>, %arg6: memref<64x2xbf16, #tpu.memory_space<vmem>>, %arg7: memref<1x2xf32, #tpu.memory_space<vmem>>, %arg8: memref<16x2xf32, #tpu.memory_space<vmem>>) attributes {dimension_semantics = [#tpu.dimension_semantics<parallel>], iteration_bounds = array<i64: 1>, scalar_prefetch = 0 : i64, scratch_operands = 0 : i64, tpu.core_type = #tpu.core_type<tc>, window_params = [{transform_indices = @transform_0, window_bounds = array<i64: 16, 50>}, {pipeline_mode = #tpu.pipeline_mode<synchronous>, transform_indices = @transform_1, window_bounds = array<i64: 50, 128>}, {pipeline_mode = #tpu.pipeline_mode<synchronous>, transform_indices = @transform_2, window_bounds = array<i64: 1, 128>}, {pipeline_mode = #tpu.pipeline_mode<synchronous>, transform_indices = @transform_3, window_bounds = array<i64: 128, 64>}, {pipeline_mode = #tpu.pipeline_mode<synchronous>, transform_indices = @transform_4, window_bounds = array<i64: 1, 64>}, {pipeline_mode = #tpu.pipeline_mode<synchronous>, transform_indices = @transform_5, window_bounds = array<i64: 64, 2>}, {pipeline_mode = #tpu.pipeline_mode<synchronous>, transform_indices = @transform_6, window_bounds = array<i64: 1, 2>}, {transform_indices = @transform_7, window_bounds = array<i64: 16, 2>}]} {
    %c0 = arith.constant 0 : index
    %c0_0 = arith.constant 0 : index
    %0 = vector.load %arg1[%c0, %c0_0] : memref<16x50xf32, #tpu.memory_space<vmem>>, vector<16x50xf32>
    %1 = arith.truncf %0 : vector<16x50xf32> to vector<16x50xbf16>
    %c0_1 = arith.constant 0 : index
    %c0_2 = arith.constant 0 : index
    %2 = vector.load %arg2[%c0_1, %c0_2] : memref<50x128xbf16, #tpu.memory_space<vmem>>, vector<50x128xbf16>
    %cst = arith.constant dense<0.000000e+00> : vector<16x128xf32>
    %3 = tpu.matmul %1, %2, %cst {dimension_numbers = #tpu.dot_dimension_numbers<[1], [0], [0], [1], [0, 0, 1, 1], [], []>} : vector<16x50xbf16>, vector<50x128xbf16>, vector<16x128xf32> -> vector<16x128xf32>
    %c0_3 = arith.constant 0 : index
    %c0_4 = arith.constant 0 : index
    %4 = vector.load %arg3[%c0_3, %c0_4] : memref<1x128xf32, #tpu.memory_space<vmem>>, vector<1x128xf32>
    %5 = vector.broadcast %4 : vector<1x128xf32> to vector<16x128xf32>
    %6 = arith.addf %3, %5 : vector<16x128xf32>
    %cst_5 = arith.constant 0.000000e+00 : f32
    %7 = vector.broadcast %cst_5 : f32 to vector<16x128xf32>
    %8 = arith.maximumf %6, %7 : vector<16x128xf32>
    %9 = arith.truncf %8 : vector<16x128xf32> to vector<16x128xbf16>
    %c0_6 = arith.constant 0 : index
    %c0_7 = arith.constant 0 : index
    %10 = vector.load %arg4[%c0_6, %c0_7] : memref<128x64xbf16, #tpu.memory_space<vmem>>, vector<128x64xbf16>
    %cst_8 = arith.constant dense<0.000000e+00> : vector<16x64xf32>
    %11 = tpu.matmul %9, %10, %cst_8 {dimension_numbers = #tpu.dot_dimension_numbers<[1], [0], [0], [1], [0, 0, 1, 1], [], []>} : vector<16x128xbf16>, vector<128x64xbf16>, vector<16x64xf32> -> vector<16x64xf32>
    %c0_9 = arith.constant 0 : index
    %c0_10 = arith.constant 0 : index
    %12 = vector.load %arg5[%c0_9, %c0_10] : memref<1x64xf32, #tpu.memory_space<vmem>>, vector<1x64xf32>
    %13 = vector.broadcast %12 : vector<1x64xf32> to vector<16x64xf32>
    %14 = arith.addf %11, %13 : vector<16x64xf32>
    %cst_11 = arith.constant 0.000000e+00 : f32
    %15 = vector.broadcast %cst_11 : f32 to vector<16x64xf32>
    %16 = arith.maximumf %14, %15 : vector<16x64xf32>
    %17 = arith.truncf %16 : vector<16x64xf32> to vector<16x64xbf16>
    %c0_12 = arith.constant 0 : index
    %c0_13 = arith.constant 0 : index
    %18 = vector.load %arg6[%c0_12, %c0_13] : memref<64x2xbf16, #tpu.memory_space<vmem>>, vector<64x2xbf16>
    %cst_14 = arith.constant dense<0.000000e+00> : vector<16x2xf32>
    %19 = tpu.matmul %17, %18, %cst_14 {dimension_numbers = #tpu.dot_dimension_numbers<[1], [0], [0], [1], [0, 0, 1, 1], [], []>} : vector<16x64xbf16>, vector<64x2xbf16>, vector<16x2xf32> -> vector<16x2xf32>
    %c0_15 = arith.constant 0 : index
    %c0_16 = arith.constant 0 : index
    %20 = vector.load %arg7[%c0_15, %c0_16] : memref<1x2xf32, #tpu.memory_space<vmem>>, vector<1x2xf32>
    %21 = vector.broadcast %20 : vector<1x2xf32> to vector<16x2xf32>
    %22 = arith.addf %19, %21 : vector<16x2xf32>
    %c0_17 = arith.constant 0 : index
    %c0_18 = arith.constant 0 : index
    %23 = vector.load %arg8[%c0_17, %c0_18] : memref<16x2xf32, #tpu.memory_space<vmem>>, vector<16x2xf32>
    tpu.vector_store %arg8[%c0_17, %c0_18], %22 {strides = array<i32>} : memref<16x2xf32, #tpu.memory_space<vmem>>, vector<16x2xf32>,
    return
  }
  func.func @transform_0(%arg0: i32) -> (i32, i32) {
    %c0_i32 = arith.constant 0 : i32
    %c0_i32_0 = arith.constant 0 : i32
    return %arg0, %c0_i32 : i32, i32
  }
  func.func @transform_1(%arg0: i32) -> (i32, i32) {
    %c0_i32 = arith.constant 0 : i32
    %c0_i32_0 = arith.constant 0 : i32
    %c0_i32_1 = arith.constant 0 : i32
    return %c0_i32, %c0_i32_0 : i32, i32
  }
  func.func @transform_2(%arg0: i32) -> (i32, i32) {
    %c0_i32 = arith.constant 0 : i32
    %c0_i32_0 = arith.constant 0 : i32
    %c0_i32_1 = arith.constant 0 : i32
    return %c0_i32, %c0_i32_0 : i32, i32
  }
  func.func @transform_3(%arg0: i32) -> (i32, i32) {
    %c0_i32 = arith.constant 0 : i32
    %c0_i32_0 = arith.constant 0 : i32
    %c0_i32_1 = arith.constant 0 : i32
    return %c0_i32, %c0_i32_0 : i32, i32
  }
  func.func @transform_4(%arg0: i32) -> (i32, i32) {
    %c0_i32 = arith.constant 0 : i32
    %c0_i32_0 = arith.constant 0 : i32
    %c0_i32_1 = arith.constant 0 : i32
    return %c0_i32, %c0_i32_0 : i32, i32
  }
  func.func @transform_5(%arg0: i32) -> (i32, i32) {
    %c0_i32 = arith.constant 0 : i32
    %c0_i32_0 = arith.constant 0 : i32
    %c0_i32_1 = arith.constant 0 : i32
    return %c0_i32, %c0_i32_0 : i32, i32
  }
  func.func @transform_6(%arg0: i32) -> (i32, i32) {
    %c0_i32 = arith.constant 0 : i32
    %c0_i32_0 = arith.constant 0 : i32
    %c0_i32_1 = arith.constant 0 : i32
    return %c0_i32, %c0_i32_0 : i32, i32
  }
  func.func @transform_7(%arg0: i32) -> (i32, i32) {
    %c0_i32 = arith.constant 0 : i32
    %c0_i32_0 = arith.constant 0 : i32
    return %arg0, %c0_i32 : i32, i32
  }
}

</mosaic_0001>

<bundles_post_ra>
// kernel: tpu_custom_call.1
= control target key start
LH: loop header
LB: loop body
LE: loop exit
PB: predicated region body
PF: predicated region fallthrough
CT: control target
= control target key end

     0   :  { %v425_v0 = vmov 0.0   ;;  %vm426_vm0 = vmmov 0   ;;  %vm69_vm1 = vcmask 1040384   ;;  %vm65_vm2 = vcmask 408576   ;;  %s558_s1 = inlined_call_operand.vmem [shape: bf16[50,128], index: 1, kind: input, shape index: {}]   ;;  %s559_s3 = inlined_call_operand.vmem [shape: bf16[128,64], index: 3, kind: input, shape index: {}]   ;;  %s560_s0 = inlined_call_operand.vmem [shape: f32[16,50], index: 0, kind: input, shape index: {}]   ;;  %s561_s5 = inlined_call_operand.vmem [shape: bf16[64,2], index: 5, kind: input, shape index: {}]   ;;  %s562_s2 = inlined_call_operand.vmem [shape: f32[1,128], index: 2, kind: input, shape index: {}]   ;;  %s563_s4 = inlined_call_operand.vmem [shape: f32[1,64], index: 4, kind: input, shape index: {}]   ;;  %s564_s6 = inlined_call_operand.vmem [shape: f32[1,2], index: 6, kind: input, shape index: {}]   ;;  %s565_s7 = inlined_call_operand.vmem [shape: f32[16,2], index: 7, kind: output, shape index: {}]  }
   0x1   :  { %363 = vmatprep.subr.bf16.mxu0 %v425_v0  ;;  %v409_v1 = vld [vmem:[%s558_s1] sm:$0xff]   ;;  %371 = vmatprep.mubr.msk.bf16.mxu0 %vm426_vm0, %v425_v0  ;;  %v410_v2 = vld [vmem:[%s558_s1 + $0x8] sm:$0xff]   ;;  %v412_v3 = vld [vmem:[%s558_s1 + $0x18] ss:$0 sps:$4 sm:$0x11]   ;;  %vm271_vm3 = vcmask 523264  }
   0x2   :  { %375 = vmatprep.subr.bf16.mxu1 %v425_v0  ;;  %391 = vmatprep.mubr.msk.bf16.mxu1 %vm426_vm0, %v425_v0  ;;  %v413_v4 = vld [vmem:[%s559_s3] sm:$0xff]   ;;  %v411_v5 = vld [vmem:[%s558_s1 + $0x10] sm:$0xff]   ;;  %v414_v6 = vld [vmem:[%s559_s3 + $0x8] sm:$0xff]   ;;  %v71_v8 = vsel %vm69_vm1, %v412_v3, 0  ;;  %vm316_vm4 = vcmask 15360  }
   0x3   :  { %364 = vmatpush3.bf16.msra.mxu0 %v409_v1  ;;  %376 = vmatpush3.bf16.msra.mxu1 %v413_v4  ;;  %v27_v7 = vld [vmem:[%s560_s0] sm:$0xff]  ;;  %v28_v9 = vld [vmem:[%s560_s0 + $0x8] sm:$0xff]  ;;  %v415_v10 = vld [vmem:[%s559_s3 + $0x10] sm:$0xff]  }
   0x4   :  { %365 = vmatprep.subr.bf16.mxu0 %v425_v0  ;;  %377 = vmatprep.subr.bf16.mxu1 %v425_v0  ;;  %v29_v11 = vpack.c.bf16 %v28_v9, %v27_v7  ;;  %v416_v12 = vld [vmem:[%s559_s3 + $0x18] sm:$0xff]   ;;  %v417_v13 = vld [vmem:[%s559_s3 + $0x20] sm:$0xff]   ;;  %v418_v14 = vld [vmem:[%s559_s3 + $0x28] sm:$0xff]  }
   0x5   :  { %v419_v15 = vld [vmem:[%s559_s3 + $0x30] sm:$0xff]   ;;  %v420_v16 = vld [vmem:[%s559_s3 + $0x38] sm:$0xff]   ;;  %v421_v17 = vld [vmem:[%s561_s5] sm:$0xff]  }
   0x6   :  { %v422_v18 = vld [vmem:[%s561_s5 + $0x8] sm:$0xff]   ;;  %v323_v19 = vld [vmem:[%s562_s2] ss:$0 sm:$0xff]  ;;  %v423_v29 = vld [vmem:[%s561_s5 + $0x10] sm:$0xff]  }
   0x7   :  { %366 = vmatpush3.bf16.msra.mxu0 %v410_v2  ;;  %378 = vmatpush3.bf16.msra.mxu1 %v414_v6  ;;  %v424_v30 = vld [vmem:[%s561_s5 + $0x18] sm:$0xff]   ;;  %v329_v31 = vld [vmem:[%s563_s4] ss:$0 sm:$0xff] }
   0x8   :  { %367 = vmatprep.subr.bf16.mxu0 %v425_v0  ;;  %379 = vmatprep.subr.bf16.mxu1 %v425_v0  ;;  %v338_v41 = vld [vmem:[%s564_s6] ss:$0 sm:$0xff] }
   0xb   :  { %368 = vmatpush3.bf16.msra.mxu0 %v411_v5  ;;  %380 = vmatpush3.bf16.msra.mxu1 %v415_v10 }
   0xc   :  { %369 = vmatprep.subr.bf16.mxu0 %v425_v0  ;;  %381 = vmatprep.subr.bf16.mxu1 %v425_v0 }
   0xf   :  { %370 = vmatpush3.bf16.msra.mxu0 %v71_v8  ;;  %382 = vmatpush3.bf16.msra.mxu1 %v416_v12 }
  0x10   :  { %395 = vmatprep.subr.bf16.mxu0 %v425_v0  ;;  %383 = vmatprep.subr.bf16.mxu1 %v425_v0 }
  0x12   :  { %372 = vmatmul.mubr.msk.bf16.vlgmr.msra.gmra.mrb[0].mxu0 %vm65_vm2, %v29_v11 }
  0x13   :  { %403 = vmatprep.mubr.msk.bf16.mxu0 %vm426_vm0, %v425_v0  ;;  %384 = vmatpush3.bf16.msra.mxu1 %v417_v13 }
  0x14   :  { %385 = vmatprep.subr.bf16.mxu1 %v425_v0  ;;  %396 = vmatpush3.bf16.msra.mxu0 %v421_v17 }
  0x15   :  { %397 = vmatprep.subr.bf16.mxu0 %v425_v0 }
  0x17   :  { %386 = vmatpush3.bf16.msra.mxu1 %v418_v14 }
  0x18   :  { %387 = vmatprep.subr.bf16.mxu1 %v425_v0  ;;  %398 = vmatpush3.bf16.msra.mxu0 %v422_v18 }
  0x19   :  { %399 = vmatprep.subr.bf16.mxu0 %v425_v0 }
  0x1b   :  { %388 = vmatpush3.bf16.msra.mxu1 %v419_v15 }
  0x1c   :  { %389 = vmatprep.subr.bf16.mxu1 %v425_v0  ;;  %400 = vmatpush3.bf16.msra.mxu0 %v423_v29 }
  0x1d   :  { %401 = vmatprep.subr.bf16.mxu0 %v425_v0 }
  0x1f   :  { %390 = vmatpush3.bf16.msra.mxu1 %v420_v16 }
  0x20   :  { %402 = vmatpush3.bf16.msra.mxu0 %v424_v30 }
  0xe5   :  { %v107_v20 = vpop.f32.mrb[0].mxu0 }
  0xe6   :  { %v108_v21 = vadd.f32 %v323_v19, %v107_v20  ;;  %v373_v22 = vpop.f32.mrb[1].mxu0 }
  0xe7   :  { %v110_v23 = vpop.f32.mrb[2].mxu0 }
  0xe8   :  { %v111_v24 = vadd.f32 %v323_v19, %v110_v23  ;;  %v374_v25 = vpop.f32.mrb[3].mxu0  ;;  %v114_v26 = vmax.f32 %v108_v21, 0.0 }
  0xea   :  { %v115_v27 = vmax.f32 %v111_v24, 0.0 }
  0xec   :  { %v116_v28 = vpack.c.bf16 %v115_v27, %v114_v26 }
  0xee   :  { %392 = vmatmul.mubr.bf16.vlgmr.msra.gmra.mrb[0].mxu1 %v116_v28 }
 0x1c1   :  { %v222_v32 = vpop.f32.mrb[0].mxu1 }
 0x1c2   :  { %v223_v33 = vadd.f32 %v329_v31, %v222_v32  ;;  %v393_v34 = vpop.f32.mrb[1].mxu1 }
 0x1c3   :  { %v225_v35 = vpop.f32.mrb[2].mxu1 }
 0x1c4   :  { %v226_v36 = vadd.f32 %v329_v31, %v225_v35  ;;  %v394_v37 = vpop.f32.mrb[3].mxu1  ;;  %v229_v38 = vmax.f32 %v223_v33, 0.0 }
 0x1c6   :  { %v230_v39 = vmax.f32 %v226_v36, 0.0 }
 0x1c8   :  { %v231_v40 = vpack.c.bf16 %v230_v39, %v229_v38 }
 0x1ca   :  { %404 = vmatmul.mubr.msk.bf16.vlgmr.msra.gmra.mrb[4].mxu0 %vm271_vm3, %v231_v40 }
 0x29d   :  { %v309_v42 = vpop.f32.mrb[4].mxu0 }
 0x29e   :  { %v310_v43 = vadd.f32 %v338_v41, %v309_v42  ;;  %v405_v44 = vpop.f32.mrb[5].mxu0 }
 0x29f   :  { %v312_v45 = vpop.f32.mrb[6].mxu0 }
 0x2a0   :  { %317 = vst.msk [vmem:[%s565_s7] sm:$0xff] %vm316_vm4, %v310_v43  ;;  %v313_v46 = vadd.f32 %v338_v41, %v312_v45  ;;  %v406_v47 = vpop.f32.mrb[7].mxu0 }
 0x2a2   :  { %318 = vst.msk [vmem:[%s565_s7 + $0x8] sm:$0xff] %vm316_vm4, %v313_v46 }

</bundles_post_ra>
